<compile_context>
chip_gen: v6e
topology: v6e:2x2x1
jax: 0.10.0
libtpu: 0.0.40
codegen_flags: <defaults>
</compile_context>

<pallas_src>
import functools

import jax
import jax.numpy as jnp
from jax import lax
from jax.experimental import pallas as pl
from jax.experimental.pallas import tpu as pltpu

_LN_EPS = 1e-6


def _layer_norm(z, g, b):
    mu = jnp.mean(z, axis=-1, keepdims=True)
    var = jnp.mean((z - mu) ** 2, axis=-1, keepdims=True)
    return (z - mu) * lax.rsqrt(var + _LN_EPS) * g + b


# ----------------------------------------------------------------------------
# Hardware-dependent defaults & helpers
# ----------------------------------------------------------------------------
def _hw_defaults():
    """(q_tile, kv_tile, inner_tile, vmem_limit_bytes) per TPU generation."""
    vmem_cap = 64 * 1024 * 1024
    try:
        vmem_cap = int(pltpu.get_tpu_info().vmem_capacity_bytes)
    except Exception:
        pass
    if vmem_cap >= 100 * 1024 * 1024:            # v5e / v6e class: 128 MiB VMEM
        return 512, 1024, 4096, 96 * 1024 * 1024
    return 256, 512, 2048, 48 * 1024 * 1024      # v7x class: 64 MiB VMEM


def _pick_tile(total, target, align=8):
    """Largest divisor of `total` that is <= target and a multiple of `align`;
    falls back to the full extent (block == full dim is always legal)."""
    t = min(target, total)
    t -= t % align
    while t >= align:
        if total % t == 0:
            return t
        t -= align
    return total


@functools.lru_cache(maxsize=1)
def _single_buffer_mode():
    """Probe whether this JAX/Mosaic build accepts pipeline_mode=pl.Buffered(1)
    (single-buffers constant-index weights, halving their VMEM residency)."""
    try:
        mode = pl.Buffered(buffer_count=1)

        def probe_kernel(x_ref, o_ref):
            o_ref[...] = x_ref[...] * 2.0

        probe = pl.pallas_call(
            probe_kernel,
            out_shape=jax.ShapeDtypeStruct((16, 128), jnp.float32),
            grid=(2,),
            in_specs=[pl.BlockSpec((8, 128), lambda i: (0, 0), pipeline_mode=mode)],
            out_specs=pl.BlockSpec((8, 128), lambda i: (i, 0)),
        )
        jax.block_until_ready(probe(jnp.ones((8, 128), jnp.float32)))
        return mode
    except Exception:
        return None


def _resident_spec(w):
    """Full-array block with a constant index: the weight stays VMEM-resident
    across all grid steps; single-buffered when the build supports it."""
    nd = w.ndim
    mode = _single_buffer_mode()
    kwargs = {} if mode is None else {"pipeline_mode": mode}
    return pl.BlockSpec(w.shape, lambda *_: (0,) * nd, **kwargs)


# ----------------------------------------------------------------------------
# Kernels
# ----------------------------------------------------------------------------
def qkv_proj_kernel(x_ref, wqkv_ref, bqkv_ref, q_out, k_out, v_out,
                    *, n_head, d_k, d_v):
    """Fused Q|K|V projection, once per token; head-major [H, t, d] outputs so
    the attention kernel never re-projects or re-lays-out K/V per q-tile."""
    mm = wqkv_ref.dtype
    t = x_ref.shape[1]
    x = x_ref[0].astype(mm)                                           # [t, D]
    proj = jnp.dot(x, wqkv_ref[...],
                   preferred_element_type=jnp.float32) + bqkv_ref[0]  # [t, H*(2dk+dv)]
    proj = jnp.swapaxes(proj.astype(mm).reshape(t, n_head, 2 * d_k + d_v), 0, 1)
    q_out[0] = proj[:, :, :d_k]                                       # [H, t, dk]
    k_out[0] = proj[:, :, d_k:2 * d_k]                                # [H, t, dk]
    v_out[0] = proj[:, :, 2 * d_k:]                                   # [H, t, dv]


def attention_kernel(x_ref, q_ref, k_ref, v_ref, wo3_ref, vec_ref, out_ref,
                     m_scr, l_scr, acc_scr, *, prob_dtype, approx_recip):
    """Flash attention (online softmax) + out-projection + residual + LN1.
    grid = (B, q-tiles, kv-tiles); Q/K/V arrive pre-projected and head-major."""
    ki = pl.program_id(2)
    nk = pl.num_programs(2)
    mm = q_ref.dtype
    n_head = wo3_ref.shape[0]

    @pl.when(ki == 0)
    def _():
        m_scr[...] = jnp.full(m_scr.shape, -jnp.inf, jnp.float32)
        l_scr[...] = jnp.zeros(l_scr.shape, jnp.float32)
        acc_scr[...] = jnp.zeros(acc_scr.shape, jnp.float32)

    q3 = q_ref[0]                                                     # [H, tq, dk]
    k3 = k_ref[0]                                                     # [H, tkv, dk]
    v3 = v_ref[0]                                                     # [H, tkv, dv]

    # head-batched scores (1/sqrt(d_k) already folded into Wq/bq)
    s = jnp.einsum("hqd,hkd->hqk", q3, k3,
                   preferred_element_type=jnp.float32)                # [H, tq, tkv]

    m_prev = m_scr[...]                                               # [H, tq, 1]
    m_new = jnp.maximum(m_prev, jnp.max(s, axis=-1, keepdims=True))
    alpha = jnp.exp(m_prev - m_new)
    # probabilities in the matmul dtype (bf16 EUP exp on v6e/v7x; f32 on v5e)
    p = jnp.exp((s - m_new).astype(prob_dtype))
    l_scr[...] = alpha * l_scr[...] + jnp.sum(p.astype(jnp.float32),
                                              axis=-1, keepdims=True)
    acc_scr[...] = alpha * acc_scr[...] + jnp.einsum(
        "hqk,hkd->hqd", p.astype(mm), v3, preferred_element_type=jnp.float32)
    m_scr[...] = m_new

    @pl.when(ki == nk - 1)
    def _():
        if approx_recip:
            inv_l = pl.reciprocal(l_scr[...], approx=True)            # EUP slot
        else:
            inv_l = 1.0 / l_scr[...]
        ctx = (acc_scr[...] * inv_l).astype(mm)                       # [H, tq, dv]
        # head-batched out-projection: no [H,tq,dv] -> [tq,H*dv] relayout
        o = x_ref[0].astype(jnp.float32) + vec_ref[0]                 # residual + bo
        for h in range(n_head):
            o = o + jnp.dot(ctx[h], wo3_ref[h],
                            preferred_element_type=jnp.float32)
        x1 = _layer_norm(o, vec_ref[1], vec_ref[2])
        out_ref[0] = x1.astype(out_ref.dtype)


def ffn_kernel(x1_ref, w1_ref, b1_ref, w2_ref, vec_ref, out_ref, acc_scr):
    """Position-wise FFN tiled over d_inner (accumulate relu(x1@W1)@W2 chunks),
    then residual + LN2.  grid = (B, q-tiles, inner-tiles)."""
    ii = pl.program_id(2)
    ni = pl.num_programs(2)
    mm = w1_ref.dtype

    @pl.when(ii == 0)
    def _():
        acc_scr[...] = jnp.zeros(acc_scr.shape, jnp.float32)

    x1 = x1_ref[0].astype(mm)                                         # [tq, D]
    h = jnp.dot(x1, w1_ref[...],
                preferred_element_type=jnp.float32) + b1_ref[0]       # [tq, ti]
    h = jnp.maximum(h, 0.0)
    acc_scr[...] += jnp.dot(h.astype(mm), w2_ref[...],
                            preferred_element_type=jnp.float32)       # [tq, D]

    @pl.when(ii == ni - 1)
    def _():
        y = acc_scr[...] + vec_ref[0] + x1_ref[0]                     # + b2 + residual
        out_ref[0] = _layer_norm(y, vec_ref[1], vec_ref[2]).astype(out_ref.dtype)


# ----------------------------------------------------------------------------
# Parameters
# ----------------------------------------------------------------------------
def init_params(key, d_model, d_inner, n_head, d_k, d_v):
    ks = jax.random.split(key, 8)
    norm = lambda k, shape, fan_in: (
        jax.random.normal(k, shape, jnp.float32) / jnp.sqrt(jnp.float32(fan_in)))
    return {
        "wq": norm(ks[0], (d_model, n_head * d_k), d_model),
        "bq": jnp.zeros((1, n_head * d_k), jnp.float32),
        "wk": norm(ks[1], (d_model, n_head * d_k), d_model),
        "bk": jnp.zeros((1, n_head * d_k), jnp.float32),
        "wv": norm(ks[2], (d_model, n_head * d_v), d_model),
        "bv": jnp.zeros((1, n_head * d_v), jnp.float32),
        "wo": norm(ks[3], (n_head * d_v, d_model), n_head * d_v),
        "bo": 0.01 * jnp.ones((1, d_model), jnp.float32),
        "ln1_g": jnp.ones((1, d_model), jnp.float32),
        "ln1_b": jnp.zeros((1, d_model), jnp.float32),
        "w1": norm(ks[4], (d_model, d_inner), d_model),
        "b1": 0.01 * jnp.ones((1, d_inner), jnp.float32),
        "w2": norm(ks[5], (d_inner, d_model), d_inner),
        "b2": 0.01 * jnp.ones((1, d_model), jnp.float32),
        "ln2_g": jnp.ones((1, d_model), jnp.float32),
        "ln2_b": jnp.zeros((1, d_model), jnp.float32),
    }


def prepare_params(params, *, n_head, d_k, d_v, matmul_dtype=jnp.bfloat16):
    """One-time weight transform (not a per-call wrapper op):
      * fold 1/sqrt(d_k) into the Q projection,
      * fuse Wq|Wk|Wv into one [D, H*(2dk+dv)] operand (per-head interleaved so a
        single reshape splits q/k/v in-kernel),
      * reshape Wo to head-major [H, dv, D] (head-batched out-projection),
      * pack small f32 vectors (biases / LayerNorm affine) into [3, D] slabs,
      * cast matmul weights to the MXU operand dtype (bf16 in prod); biases and
        LayerNorm parameters stay f32."""
    D = params["wq"].shape[0]
    scale = 1.0 / (d_k ** 0.5)
    cast = lambda w: w.astype(matmul_dtype)

    wq = cast(params["wq"] * scale).reshape(D, n_head, d_k)
    wk = cast(params["wk"]).reshape(D, n_head, d_k)
    wv = cast(params["wv"]).reshape(D, n_head, d_v)
    wqkv = jnp.concatenate([wq, wk, wv], axis=2).reshape(D, n_head * (2 * d_k + d_v))

    bq = (params["bq"][0] * scale).reshape(n_head, d_k)
    bk = params["bk"][0].reshape(n_head, d_k)
    bv = params["bv"][0].reshape(n_head, d_v)
    bqkv = jnp.concatenate([bq, bk, bv], axis=1).reshape(
        1, n_head * (2 * d_k + d_v)).astype(jnp.float32)

    return {
        "wqkv": wqkv,
        "bqkv": bqkv,
        "wo3": cast(params["wo"]).reshape(n_head, d_v, D),
        "attn_vecs": jnp.stack([params["bo"][0], params["ln1_g"][0],
                                params["ln1_b"][0]]).astype(jnp.float32),
        "w1": cast(params["w1"]),
        "b1": params["b1"].astype(jnp.float32),
        "w2": cast(params["w2"]),
        "ffn_vecs": jnp.stack([params["b2"][0], params["ln2_g"][0],
                               params["ln2_b"][0]]).astype(jnp.float32),
    }


# ----------------------------------------------------------------------------
# Wrapper
# ----------------------------------------------------------------------------
def encoder_layer(x, prepared, *, n_head, d_k, d_v, q_tile=None, kv_tile=None,
                  inner_tile=None, proj_tile=None, prob_dtype=None,
                  approx_reciprocal=True):
    """x: [B, L, D] f32.  `prepared` must come from prepare_params()."""
    B, L, D = x.shape
    mm = prepared["wqkv"].dtype
    d_inner = prepared["w1"].shape[1]

    dq, dkv, dti, vmem_limit = _hw_defaults()
    tq = _pick_tile(L, q_tile or dq)
    tkv = _pick_tile(L, kv_tile or dkv)
    tp = _pick_tile(L, proj_tile or dkv)
    ti = _pick_tile(d_inner, inner_tile or dti, align=128)
    if B * (L // tq) < 2:                       # feed both v7x TensorCores
        half = _pick_tile(L, max(8, tq // 2))
        if half < L:
            tq = half
    if prob_dtype is None:
        prob_dtype = mm                         # pass jnp.float32 on v5e (no bf16 EUP)

    cparams = lambda sem: pltpu.CompilerParams(
        dimension_semantics=sem, vmem_limit_bytes=vmem_limit)

    # ---- 1) fused QKV projection (once per token, head-major outputs) ------
    q3, k3, v3 = pl.pallas_call(
        functools.partial(qkv_proj_kernel, n_head=n_head, d_k=d_k, d_v=d_v),
        out_shape=(
            jax.ShapeDtypeStruct((B, n_head, L, d_k), mm),
            jax.ShapeDtypeStruct((B, n_head, L, d_k), mm),
            jax.ShapeDtypeStruct((B, n_head, L, d_v), mm),
        ),
        grid=(B, L // tp),
        in_specs=[
            pl.BlockSpec((1, tp, D), lambda b, i: (b, i, 0)),
            _resident_spec(prepared["wqkv"]),
            _resident_spec(prepared["bqkv"]),
        ],
        out_specs=(
            pl.BlockSpec((1, n_head, tp, d_k), lambda b, i: (b, 0, i, 0)),
            pl.BlockSpec((1, n_head, tp, d_k), lambda b, i: (b, 0, i, 0)),
            pl.BlockSpec((1, n_head, tp, d_v), lambda b, i: (b, 0, i, 0)),
        ),
        compiler_params=cparams(("parallel", "parallel")),
    )(x, prepared["wqkv"], prepared["bqkv"])

    # ---- 2) flash attention + out-proj + residual + LN1 --------------------
    x1 = pl.pallas_call(
        functools.partial(attention_kernel, prob_dtype=prob_dtype,
                          approx_recip=approx_reciprocal),
        out_shape=jax.ShapeDtypeStruct((B, L, D), x.dtype),
        grid=(B, L // tq, L // tkv),
        in_specs=[
            pl.BlockSpec((1, tq, D), lambda b, qi, ki: (b, qi, 0)),        # residual
            pl.BlockSpec((1, n_head, tq, d_k), lambda b, qi, ki: (b, 0, qi, 0)),
            pl.BlockSpec((1, n_head, tkv, d_k), lambda b, qi, ki: (b, 0, ki, 0)),
            pl.BlockSpec((1, n_head, tkv, d_v), lambda b, qi, ki: (b, 0, ki, 0)),
            _resident_spec(prepared["wo3"]),
            _resident_spec(prepared["attn_vecs"]),
        ],
        out_specs=pl.BlockSpec((1, tq, D), lambda b, qi, ki: (b, qi, 0)),
        scratch_shapes=[
            pltpu.VMEM((n_head, tq, 1), jnp.float32),    # running max
            pltpu.VMEM((n_head, tq, 1), jnp.float32),    # running sum
            pltpu.VMEM((n_head, tq, d_v), jnp.float32),  # output accumulator
        ],
        compiler_params=cparams(("parallel", "parallel", "arbitrary")),
    )(x, q3, k3, v3, prepared["wo3"], prepared["attn_vecs"])

    # ---- 3) FFN tiled over d_inner + residual + LN2 -------------------------
    out = pl.pallas_call(
        ffn_kernel,
        out_shape=jax.ShapeDtypeStruct((B, L, D), x.dtype),
        grid=(B, L // tq, d_inner // ti),
        in_specs=[
            pl.BlockSpec((1, tq, D), lambda b, qi, ii: (b, qi, 0)),
            pl.BlockSpec((D, ti), lambda b, qi, ii: (0, ii)),
            pl.BlockSpec((1, ti), lambda b, qi, ii: (0, ii)),
            pl.BlockSpec((ti, D), lambda b, qi, ii: (ii, 0)),
            _resident_spec(prepared["ffn_vecs"]),
        ],
        out_specs=pl.BlockSpec((1, tq, D), lambda b, qi, ii: (b, qi, 0)),
        scratch_shapes=[pltpu.VMEM((tq, D), jnp.float32)],
        compiler_params=cparams(("parallel", "parallel", "arbitrary")),
    )(x1, prepared["w1"], prepared["b1"], prepared["w2"], prepared["ffn_vecs"])
    return out


# ----------------------------------------------------------------------------
# References
# ----------------------------------------------------------------------------
def encoder_layer_ref(x, params, *, n_head, d_k, d_v,
                      matmul_dtype=jnp.bfloat16, prob_dtype=None):
    """Pure-JAX reference mirroring the kernel's mixed-precision recipe."""
    B, L, _ = x.shape
    mm = matmul_dtype
    if prob_dtype is None:
        prob_dtype = mm
    scale = 1.0 / (d_k ** 0.5)
    dot = lambda a, w: jnp.dot(a.astype(mm), w.astype(mm),
                               preferred_element_type=jnp.float32)
    q = dot(x, params["wq"] * scale) + params["bq"][0] * scale
    k = dot(x, params["wk"]) + params["bk"][0]
    v = dot(x, params["wv"]) + params["bv"][0]
    q = q.astype(mm).reshape(B, L, n_head, d_k).transpose(0, 2, 1, 3)
    k = k.astype(mm).reshape(B, L, n_head, d_k).transpose(0, 2, 1, 3)
    v = v.astype(mm).reshape(B, L, n_head, d_v).transpose(0, 2, 1, 3)
    s = jnp.einsum("bhqd,bhkd->bhqk", q, k, preferred_element_type=jnp.float32)
    m = jnp.max(s, axis=-1, keepdims=True)
    p = jnp.exp((s - m).astype(prob_dtype)).astype(jnp.float32)
    l = jnp.sum(p, axis=-1, keepdims=True)
    ctx = jnp.einsum("bhqk,bhkd->bhqd", p.astype(mm), v,
                     preferred_element_type=jnp.float32) / l
    ctx = ctx.transpose(0, 2, 1, 3).reshape(B, L, n_head * d_v)
    o = dot(ctx, params["wo"]) + params["bo"][0] + x
    x1 = _layer_norm(o, params["ln1_g"][0], params["ln1_b"][0])
    h1 = jnp.maximum(dot(x1, params["w1"]) + params["b1"][0], 0.0)
    y = dot(h1, params["w2"]) + params["b2"][0] + x1
    return _layer_norm(y, params["ln2_g"][0], params["ln2_b"][0])


def encoder_layer_ref_f32(x, p, *, n_head, d_k, d_v):
    """Full-precision reference of the original PyTorch module."""
    B, L, _ = x.shape
    q = (x @ p["wq"] + p["bq"][0]).reshape(B, L, n_head, d_k).transpose(0, 2, 1, 3)
    k = (x @ p["wk"] + p["bk"][0]).reshape(B, L, n_head, d_k).transpose(0, 2, 1, 3)
    v = (x @ p["wv"] + p["bv"][0]).reshape(B, L, n_head, d_v).transpose(0, 2, 1, 3)
    s = jnp.einsum("bhqd,bhkd->bhqk", q, k) / (d_k ** 0.5)
    a = jax.nn.softmax(s, axis=-1)
    o = jnp.einsum("bhqk,bhkd->bhqd", a, v).transpose(0, 2, 1, 3).reshape(B, L, -1)
    o = o @ p["wo"] + p["bo"][0] + x
    x1 = _layer_norm(o, p["ln1_g"][0], p["ln1_b"][0])
    y = jnp.maximum(x1 @ p["w1"] + p["b1"][0], 0.0) @ p["w2"] + p["b2"][0]
    return _layer_norm(y + x1, p["ln2_g"][0], p["ln2_b"][0])


if __name__ == "__main__":
    d_model, d_inner, n_head, d_k, d_v = 32, 64, 4, 8, 8
    B, L = 2, 8

    key = jax.random.PRNGKey(0)
    kx, kp = jax.random.split(key)
    x = jax.random.normal(kx, (B, L, d_model), jnp.float32)
    params = init_params(kp, d_model, d_inner, n_head, d_k, d_v)

    # --- production path: bf16 MXU operands, f32 accumulation / statistics --
    prep_bf16 = prepare_params(params, n_head=n_head, d_k=d_k, d_v=d_v,
                               matmul_dtype=jnp.bfloat16)
    out = encoder_layer(x, prep_bf16, n_head=n_head, d_k=d_k, d_v=d_v)
    out = jax.block_until_ready(out)
    assert out.shape == (B, L, d_model)
    ref_mixed = encoder_layer_ref(x, params, n_head=n_head, d_k=d_k, d_v=d_v,
                                  matmul_dtype=jnp.bfloat16)
    # tolerance covers the approximate EUP reciprocal + bf16 softmax probs
    assert jnp.allclose(out, ref_mixed, atol=2e-2, rtol=2e-2), \
        "mismatch vs mixed-precision reference"

    # --- f32 path: fidelity to the original full-precision module -----------
    prep_f32 = prepare_params(params, n_head=n_head, d_k=d_k, d_v=d_v,
                              matmul_dtype=jnp.float32)
    out_f32 = encoder_layer(x, prep_f32, n_head=n_head, d_k=d_k, d_v=d_v)
    out_f32 = jax.block_until_ready(out_f32)
    ref_f32 = encoder_layer_ref_f32(x, params, n_head=n_head, d_k=d_k, d_v=d_v)
    assert jnp.allclose(out_f32, ref_f32, atol=1e-2, rtol=1e-2), \
        "mismatch vs f32 reference"

    print("KERNEL_OK")
</pallas_src>

<mosaic_0001>
module attributes {stable_mosaic.version = 11 : i64} {
  func.func @probe_kernel(%arg0: i32, %arg1: memref<8x128xf32, #tpu.memory_space<vmem>>, %arg2: memref<8x128xf32, #tpu.memory_space<vmem>>) attributes {dimension_semantics = [#tpu.dimension_semantics<arbitrary>], iteration_bounds = array<i64: 2>, scalar_prefetch = 0 : i64, scratch_operands = 0 : i64, tpu.core_type = #tpu.core_type<tc>, window_params = [{pipeline_mode = #tpu.pipeline_mode<synchronous>, transform_indices = @transform_0, window_bounds = array<i64: 8, 128>}, {transform_indices = @transform_1, window_bounds = array<i64: 8, 128>}]} {
    %c0 = arith.constant 0 : index
    %c0_0 = arith.constant 0 : index
    %0 = vector.load %arg1[%c0, %c0_0] : memref<8x128xf32, #tpu.memory_space<vmem>>, vector<8x128xf32>
    %cst = arith.constant 2.000000e+00 : f32
    %1 = vector.broadcast %cst : f32 to vector<8x128xf32>
    %2 = arith.mulf %0, %1 : vector<8x128xf32>
    %c0_1 = arith.constant 0 : index
    %c0_2 = arith.constant 0 : index
    %3 = vector.load %arg2[%c0_1, %c0_2] : memref<8x128xf32, #tpu.memory_space<vmem>>, vector<8x128xf32>
    tpu.vector_store %arg2[%c0_1, %c0_2], %2 {strides = array<i32>} : memref<8x128xf32, #tpu.memory_space<vmem>>, vector<8x128xf32>,
    return
  }
  func.func @transform_0(%arg0: i32) -> (i32, i32) {
    %c0_i32 = arith.constant 0 : i32
    %c0_i32_0 = arith.constant 0 : i32
    %c0_i32_1 = arith.constant 0 : i32
    return %c0_i32, %c0_i32_0 : i32, i32
  }
  func.func @transform_1(%arg0: i32) -> (i32, i32) {
    %c0_i32 = arith.constant 0 : i32
    %c0_i32_0 = arith.constant 0 : i32
    return %arg0, %c0_i32 : i32, i32
  }
}

module attributes {stable_mosaic.version = 11 : i64} {
  func.func @qkv_proj_kernel(%arg0: i32, %arg1: i32, %arg2: memref<1x8x32xf32, #tpu.memory_space<vmem>>, %arg3: memref<32x96xbf16, #tpu.memory_space<vmem>>, %arg4: memref<1x96xf32, #tpu.memory_space<vmem>>, %arg5: memref<1x4x8x8xbf16, #tpu.memory_space<vmem>>, %arg6: memref<1x4x8x8xbf16, #tpu.memory_space<vmem>>, %arg7: memref<1x4x8x8xbf16, #tpu.memory_space<vmem>>) attributes {dimension_semantics = [#tpu.dimension_semantics<parallel>, #tpu.dimension_semantics<parallel>], iteration_bounds = array<i64: 2, 1>, scalar_prefetch = 0 : i64, scratch_operands = 0 : i64, tpu.core_type = #tpu.core_type<tc>, window_params = [{transform_indices = @transform_0, window_bounds = array<i64: 1, 8, 32>}, {pipeline_mode = #tpu.pipeline_mode<synchronous>, transform_indices = @transform_1, window_bounds = array<i64: 32, 96>}, {pipeline_mode = #tpu.pipeline_mode<synchronous>, transform_indices = @transform_2, window_bounds = array<i64: 1, 96>}, {transform_indices = @transform_3, window_bounds = array<i64: 1, 4, 8, 8>}, {transform_indices = @transform_4, window_bounds = array<i64: 1, 4, 8, 8>}, {transform_indices = @transform_5, window_bounds = array<i64: 1, 4, 8, 8>}]} {
    %c0 = arith.constant 0 : index
    %c0_0 = arith.constant 0 : index
    %c0_1 = arith.constant 0 : index
    %0 = vector.load %arg2[%c0, %c0_0, %c0_1] : memref<1x8x32xf32, #tpu.memory_space<vmem>>, vector<1x8x32xf32>
    %1 = vector.shape_cast %0 : vector<1x8x32xf32> to vector<8x32xf32>
    %2 = arith.truncf %1 : vector<8x32xf32> to vector<8x32xbf16>
    %c0_2 = arith.constant 0 : index
    %c0_3 = arith.constant 0 : index
    %3 = vector.load %arg3[%c0_2, %c0_3] : memref<32x96xbf16, #tpu.memory_space<vmem>>, vector<32x96xbf16>
    %cst = arith.constant dense<0.000000e+00> : vector<8x96xf32>
    %4 = tpu.matmul %2, %3, %cst {dimension_numbers = #tpu.dot_dimension_numbers<[1], [0], [0], [1], [0, 0, 1, 1], [], []>} : vector<8x32xbf16>, vector<32x96xbf16>, vector<8x96xf32> -> vector<8x96xf32>
    %c0_4 = arith.constant 0 : index
    %c0_5 = arith.constant 0 : index
    %5 = vector.load %arg4[%c0_4, %c0_5] : memref<1x96xf32, #tpu.memory_space<vmem>>, vector<1x96xf32>
    %6 = vector.shape_cast %5 : vector<1x96xf32> to vector<96xf32>
    %7 = vector.shape_cast %6 : vector<96xf32> to vector<1x96xf32>
    %8 = vector.broadcast %7 : vector<1x96xf32> to vector<8x96xf32>
    %9 = arith.addf %4, %8 : vector<8x96xf32>
    %10 = arith.truncf %9 : vector<8x96xf32> to vector<8x96xbf16>
    %11 = vector.shape_cast %10 : vector<8x96xbf16> to vector<8x4x24xbf16>
    %12 = tpu.transpose %11, [1, 0, 2] : vector<8x4x24xbf16> -> vector<4x8x24xbf16>
    %13 = vector.extract_strided_slice %12 {offsets = [0, 0, 0], sizes = [4, 8, 8], strides = [1, 1, 1]} : vector<4x8x24xbf16> to vector<4x8x8xbf16>
    %c0_6 = arith.constant 0 : index
    %c0_7 = arith.constant 0 : index
    %c0_8 = arith.constant 0 : index
    %c0_9 = arith.constant 0 : index
    %14 = vector.load %arg5[%c0_6, %c0_7, %c0_8, %c0_9] : memref<1x4x8x8xbf16, #tpu.memory_space<vmem>>, vector<1x4x8x8xbf16>
    %15 = vector.shape_cast %14 : vector<1x4x8x8xbf16> to vector<4x8x8xbf16>
    %16 = vector.shape_cast %13 : vector<4x8x8xbf16> to vector<1x4x8x8xbf16>
    tpu.vector_store %arg5[%c0_6, %c0_7, %c0_8, %c0_9], %16 {strides = array<i32>} : memref<1x4x8x8xbf16, #tpu.memory_space<vmem>>, vector<1x4x8x8xbf16>,
    %17 = vector.extract_strided_slice %12 {offsets = [0, 0, 8], sizes = [4, 8, 8], strides = [1, 1, 1]} : vector<4x8x24xbf16> to vector<4x8x8xbf16>
    %c0_10 = arith.constant 0 : index
    %c0_11 = arith.constant 0 : index
    %c0_12 = arith.constant 0 : index
    %c0_13 = arith.constant 0 : index
    %18 = vector.load %arg6[%c0_10, %c0_11, %c0_12, %c0_13] : memref<1x4x8x8xbf16, #tpu.memory_space<vmem>>, vector<1x4x8x8xbf16>
    %19 = vector.shape_cast %18 : vector<1x4x8x8xbf16> to vector<4x8x8xbf16>
    %20 = vector.shape_cast %17 : vector<4x8x8xbf16> to vector<1x4x8x8xbf16>
    tpu.vector_store %arg6[%c0_10, %c0_11, %c0_12, %c0_13], %20 {strides = array<i32>} : memref<1x4x8x8xbf16, #tpu.memory_space<vmem>>, vector<1x4x8x8xbf16>,
    %21 = vector.extract_strided_slice %12 {offsets = [0, 0, 16], sizes = [4, 8, 8], strides = [1, 1, 1]} : vector<4x8x24xbf16> to vector<4x8x8xbf16>
    %c0_14 = arith.constant 0 : index
    %c0_15 = arith.constant 0 : index
    %c0_16 = arith.constant 0 : index
    %c0_17 = arith.constant 0 : index
    %22 = vector.load %arg7[%c0_14, %c0_15, %c0_16, %c0_17] : memref<1x4x8x8xbf16, #tpu.memory_space<vmem>>, vector<1x4x8x8xbf16>
    %23 = vector.shape_cast %22 : vector<1x4x8x8xbf16> to vector<4x8x8xbf16>
    %24 = vector.shape_cast %21 : vector<4x8x8xbf16> to vector<1x4x8x8xbf16>
    tpu.vector_store %arg7[%c0_14, %c0_15, %c0_16, %c0_17], %24 {strides = array<i32>} : memref<1x4x8x8xbf16, #tpu.memory_space<vmem>>, vector<1x4x8x8xbf16>,
    return
  }
  func.func @transform_0(%arg0: i32, %arg1: i32) -> (i32, i32, i32) {
    %c0_i32 = arith.constant 0 : i32
    %c0_i32_0 = arith.constant 0 : i32
    return %arg0, %arg1, %c0_i32 : i32, i32, i32
  }
  func.func @transform_1(%arg0: i32, %arg1: i32) -> (i32, i32) {
    %c0_i32 = arith.constant 0 : i32
    %c0_i32_0 = arith.constant 0 : i32
    %c0_i32_1 = arith.constant 0 : i32
    return %c0_i32, %c0_i32_0 : i32, i32
  }
  func.func @transform_2(%arg0: i32, %arg1: i32) -> (i32, i32) {
    %c0_i32 = arith.constant 0 : i32
    %c0_i32_0 = arith.constant 0 : i32
    %c0_i32_1 = arith.constant 0 : i32
    return %c0_i32, %c0_i32_0 : i32, i32
  }
  func.func @transform_3(%arg0: i32, %arg1: i32) -> (i32, i32, i32, i32) {
    %c0_i32 = arith.constant 0 : i32
    %c0_i32_0 = arith.constant 0 : i32
    %c0_i32_1 = arith.constant 0 : i32
    return %arg0, %c0_i32, %arg1, %c0_i32_0 : i32, i32, i32, i32
  }
  func.func @transform_4(%arg0: i32, %arg1: i32) -> (i32, i32, i32, i32) {
    %c0_i32 = arith.constant 0 : i32
    %c0_i32_0 = arith.constant 0 : i32
    %c0_i32_1 = arith.constant 0 : i32
    return %arg0, %c0_i32, %arg1, %c0_i32_0 : i32, i32, i32, i32
  }
  func.func @transform_5(%arg0: i32, %arg1: i32) -> (i32, i32, i32, i32) {
    %c0_i32 = arith.constant 0 : i32
    %c0_i32_0 = arith.constant 0 : i32
    %c0_i32_1 = arith.constant 0 : i32
    return %arg0, %c0_i32, %arg1, %c0_i32_0 : i32, i32, i32, i32
  }
}

</mosaic_0001>

<bundles_post_ra>
// kernel: tpu_custom_call.1
= control target key start
LH: loop header
LB: loop body
LE: loop exit
PB: predicated region body
PF: predicated region fallthrough
CT: control target
= control target key end

     0   :  { %6 = vsyncpa [#allocation3], 0  ;;  %s448_s0 = inlined_call_operand.hbm [shape: f32[8,128], index: 0, kind: input, shape index: {}]   ;;  %s449_s1 = inlined_call_operand.hbm [shape: f32[16,128], index: 1, kind: output, shape index: {}]  }
   0x1   :  { %7 = vsyncpa [#allocation4], 0 }
   0x2   :  { %9 = vsyncpa [#allocation4 + $0x1], 0  ;;  %s348_s6 = smov 0   ;;  %s350_s7 = smov 0  }
   0x3   :  { %s352_s8 = smov 0   ;;  %s354_s9 = smov 0  }
   0x4 LB: > { %s369_s10 = sadd.s32 4294967295, %s334_s9   ;;  %s184_s11 = sadd.s32 4294967294, %s334_s9   ;;  %s334_s9 = sphi %s354_s9, %s457_s9   ;;  %s330_s8 = sphi %s352_s8, %s456_s8   ;;  %s326_s7 = sphi %s350_s7, %s455_s7   ;;  %s322_s6 = sphi %s348_s6, %s454_s6  }
   0x5   : > { %s373_s12 = sadd.s32 1, %s334_s9   ;;  %s43_s13 = sadd.s32 1, %s330_s8 }
   0x6   : > { %s40_s14 = ssub.s32 %s334_s9, %s373_s12  ;;  %p53_p0 = scmp.ne.s32.totalorder %s330_s8, %s326_s7 }
   0x7   : > { %p41_p1 = scmp.eq.s32.totalorder %s40_s14, 0  ;;  %p54_p2 = scmp.eq.s32.totalorder %s369_s10, 1 }
   0x8   : > { %p59_p3 = scmp.ne.s32.totalorder %s326_s7, %s322_s6  ;;  %p60_p4 = scmp.eq.s32.totalorder %s184_s11, 1 }
   0x9   : > { %s384_s15 = scalar_select %p41_p1, %s330_s8, %s43_s13  }
   0xa   : > { %p386_p5 = por %p54_p2, %p53_p0  ;;  %p390_p6 = por %p60_p4, %p59_p3 }
   0xb   : > { %p185_p7 = scmp.ge.s32.totalorder %s334_s9, 1  ;;  %p67_p8 = scmp.lt.s32.totalorder %s334_s9, 3 }
   0xc   : > { %s451_s17 = scalar_select %p390_p6, 1, 0 }
   0xd   : > { %p208_p9 = scmp.eq.s32.totalorder %s369_s10, 0  ;;  %p397_p10 = pnand %p185_p7, %p67_p8 }
   0xe   : > { %s336_s19 = smov [#allocation2]  }
   0xf   : > { %s80_s20 = sshll.u32 %s336_s19, 4  ;;  %p200_p11 = pneg %p397_p10  ;;  %s81_s20 = int_to_ptr.vmem [resolvable:$true] %s80_s20 }
  0x10   : > { %s255_s21 = scalar_lea.vmem %s81_s20, 128  ;;  %p263_p3 = scmp.lt.s32.totalorder %s81_s20, %s81_s20 }
  0x11   : > { %p201_p12 = pnand %p208_p9, %p200_p11  ;;  %p256_p0 = scmp.ne.s32.totalorder %s81_s20, %s255_s21 }
  0x12   : > { %p264_p4 = scmp.lt.s32.totalorder %s255_s21, %s255_s21 }
  0x13   : > { %p246_p13 = pneg %p201_p12 }
  0x14   : > { %p265_p6 = por %p264_p4, %p263_p3 }
  0x15   : > { %p258_p1 = pnand %p256_p0, %p246_p13 }
  0x17   : > { %p259_p2 = pneg %p258_p1 }
  0x19   : > { %p266_p7 = pnand %p265_p6, %p259_p2 }
  0x1b   : > { %269 = shalt.err (!%p266_p7)
}
  0x1c   : > { %203 = dma.hbm_to_vmem [thread:$0]  (!%p201_p12), %s448_s0, 128, %s81_s20, [#allocation3]  }
  0x1d   : > { %93 = sbr.rel (%p397_p10) target bundleno = 60 (0x3c), region = 24 }
  0x22   : > { %313 = dma.done.wait (%p208_p9), [#allocation3], 128  }
  0x23   : > { %315 = vsyncadd (%p208_p9), [#allocation3], 4294967168  ;;  %s105_s24 = sand.u32 1, %s326_s7   ;;  %s191_s28 = sshll.u32 %s369_s10, 7  ;;  %v108_v0 = vld [vmem:[#allocation2] sm:$0xff] }
  0x24   : > { %s189_s25 = sshll.u32 %s105_s24, 3  ;;  %v109_v1 = vmul.f32 2.0, %v108_v0  ;;  %s123_s2 = scalar_lea.hbm %s449_s1, %s191_s28 }
  0x25   : > { %s107_s26 = scalar_lea.vmem [#allocation5], %s189_s25  ;;  %s112_s3 = scalar_lea.sflag [#allocation4], %s105_s24 }
  0x26   : > { %s125_s27 = sshll.u32 %s107_s26, 4  ;;  %110 = vst [vmem:[%s107_s26] sm:$0xff] %v109_v1  ;;  %s337_s5 = smov [#allocation5]   ;;  %s126_s27 = int_to_ptr.vmem [resolvable:$true] %s125_s27 }
  0x27   : > { %s270_s4 = scalar_lea.vmem %s126_s27, 128  ;;  %s274_s11 = sshll.u32 %s337_s5, 4  ;;  %s275_s11 = int_to_ptr.vmem [resolvable:$false] %s274_s11 }
  0x28   : > { %p271_p6 = scmp.ne.s32.totalorder %s126_s27, %s270_s4  ;;  %s276_s13 = scalar_lea.vmem %s275_s11, 256 }
  0x29   : > { %p277_p10 = scmp.lt.s32.totalorder %s126_s27, %s275_s11  ;;  %p278_p11 = scmp.lt.s32.totalorder %s276_s13, %s270_s4 }
  0x2a   : > { %p272_p8 = pnand %p271_p6, %p386_p5 }
  0x2b   : > { %p279_p12 = por %p278_p11, %p277_p10 }
  0x2c   : > { %p273_p9 = pneg %p272_p8 }
  0x2e   : > { %p280_p13 = pnand %p279_p12, %p273_p9 }
  0x30   : > { %283 = shalt.err (!%p280_p13)
}
  0x31   : > { %s284_s10 = scalar_lea.hbm %s123_s2, 128  ;;  %s288_s19 = scalar_lea.hbm %s449_s1, 256 }
  0x32   : > { %p285_p0 = scmp.ne.s32.totalorder %s123_s2, %s284_s10  ;;  %p289_p3 = scmp.lt.s32.totalorder %s123_s2, %s449_s1 }
  0x33   : > { %p290_p4 = scmp.lt.s32.totalorder %s288_s19, %s284_s10 }
  0x34   : > { %p286_p1 = pnand %p285_p0, %p386_p5 }
  0x35   : > { %p291_p7 = por %p290_p4, %p289_p3 }
  0x36   : > { %p287_p2 = pneg %p286_p1 }
  0x38   : > { %p292_p6 = pnand %p291_p7, %p287_p2 }
  0x3a   : > { %295 = shalt.err (!%p292_p6)
}
  0x3b   : > { %198 = dma.vmem_to_hbm [thread:$0]  (%p386_p5), %s126_s27, 128, %s123_s2, %s112_s3  }
  0x3c PF: > { %p210_p8 = scmp.ge.s32.totalorder %s334_s9, 2  ;;  %s137_s22 = sand.u32 1, %s322_s6  }
  0x3d   : > { %p453_p9 = scmp.ne.s32.totalorder %s451_s17, 0  ;;  %s138_s23 = scalar_lea.sflag [#allocation4], %s137_s22 }
  0x3f   : > { %p205_p10 = pnand %p210_p8, %p453_p9 }
  0x41   : > { %p206_p11 = pneg %p205_p10 }
  0x43   : > { %317 = dma.done.wait (%p206_p11), %s138_s23, 128  }
  0x44   : > { %319 = vsyncadd (%p206_p11), %s138_s23, 4294967168  ;;  %p12_p12 = scmp.ge.s32.totalorder %s373_s12, 4   ;;  %s454_s6 = smov %s326_s7 }
  0x45   : > { %s455_s7 = smov %s330_s8  ;;  %s456_s8 = smov %s384_s15 }
  0x46   : > { %s457_s9 = smov %s373_s12  ;;  %14 = sbr.rel (!%p12_p12) target bundleno = 4 (0x4), region = 61 }
  0x4b   :  { %143 = vsyncpa [#allocation3], 1 }
  0x4c   :  { %145 = vsyncpa [#allocation3 + $0x1], 1 }
  0x4d   :  { %146 = vsyncpa [#allocation4], 1 }
  0x4e   :  { %148 = vsyncpa [#allocation4 + $0x1], 1 }

// kernel: tpu_custom_call.1
= control target key start
LH: loop header
LB: loop body
LE: loop exit
PB: predicated region body
PF: predicated region fallthrough
CT: control target
= control target key end

     0   :  { %s1482_s0 = inlined_call_operand.hbm [shape: f32[2,8,32], index: 0, kind: input, shape index: {}]   ;;  %s1483_s1 = inlined_call_operand.hbm [shape: bf16[32,96], index: 1, kind: input, shape index: {}]   ;;  %s1484_s2 = inlined_call_operand.vmem [shape: f32[1,96], index: 2, kind: input, shape index: {}]   ;;  %s1485_s3 = inlined_call_operand.hbm [shape: bf16[2,4,8,8], index: 3, kind: output, shape index: {0}]   ;;  %s1486_s4 = inlined_call_operand.hbm [shape: bf16[2,4,8,8], index: 4, kind: output, shape index: {1}]   ;;  %s1487_s5 = inlined_call_operand.hbm [shape: bf16[2,4,8,8], index: 5, kind: output, shape index: {2}]  }
   0x1   :  { %1491 = sst [smem:[#allocation16_spill]] %s1483_s1 }
   0x2   :  { %11 = vsyncpa [#allocation3], 0 }
   0x3   :  { %13 = vsyncpa [#allocation3 + $0x1], 0 }
   0x4   :  { %14 = vsyncpa [#allocation6], 0 }
   0x5   :  { %15 = vsyncpa [#allocation4], 0 }
   0x6   :  { %17 = vsyncpa [#allocation4 + $0x1], 0 }
   0x7   :  { %18 = vsyncpa [#allocation9], 0 }
   0x8   :  { %20 = vsyncpa [#allocation9 + $0x1], 0  ;;  %s1190_s18 = smov 0   ;;  %s1192_s19 = smov 0  }
   0x9   :  { %s1194_s20 = smov 0   ;;  %s1196_s21 = smov 0  }
   0xa   :  { %s1198_s22 = smov 0   ;;  %s1200_s23 = smov 0  }
   0xb LB: > { %s1221_s24 = sadd.s32 4294967295, %s1139_s23   ;;  %s1488_s25 = sadd.s32 4294967294, %s1139_s23   ;;  %s1139_s23 = sphi %s1200_s23, %s26_s23   ;;  %s1135_s22 = sphi %s1198_s22, %s1512_s22   ;;  %s1131_s21 = sphi %s1196_s21, %s1511_s21   ;;  %s1127_s20 = sphi %s1194_s20, %s1510_s20   ;;  %s1123_s19 = sphi %s1192_s19, %s1509_s19   ;;  %s1119_s18 = sphi %s1190_s18, %s1508_s18  }
   0xc   : > { %p60_p0 = scmp.ne.s32.totalorder %s1123_s19, %s1119_s18  ;;  %p1490_p1 = scmp.eq.s32.totalorder %s1221_s24, 0 }
   0xd   : > { %p134_p3 = scmp.eq.s32.totalorder %s1488_s25, 1  ;;  %p802_p5 = scmp.ge.s32.totalorder %s1139_s23, 1 }
   0xe   : > { %p1232_p4 = por %p1490_p1, %p60_p0  ;;  %p197_p7 = scmp.lt.s32.totalorder %s1139_s23, 3 }
   0xf   : > { %p1237_p6 = por %p134_p3, %p60_p0  ;;  %s1141_s29 = smov [#allocation5]  }
  0x10   : > { %p1242_p8 = pnand %p802_p5, %p197_p7  ;;  %s209_s30 = sshll.u32 %s1141_s29, 4  ;;  %s210_s30 = int_to_ptr.vmem [resolvable:$true] %s209_s30 }
  0x11   : > { %s1493_s27 = scalar_select %p1237_p6, 1, 0 }
  0x12   : > { %p858_p9 = pneg %p1242_p8  ;;  %s38_s7 = sadd.s32 1, %s1135_s22 }
  0x13   : > { %s956_s8 = scalar_lea.vmem %s210_s30, 256  ;;  %p964_p5 = scmp.lt.s32.totalorder %s210_s30, %s210_s30 }
  0x14   : > { %p1251_p11 = pnand %p858_p9, %p1490_p1  ;;  %p957_p13 = scmp.ne.s32.totalorder %s210_s30, %s956_s8 }
  0x15   : > { %p965_p7 = scmp.lt.s32.totalorder %s956_s8, %s956_s8 }
  0x16   : > { %p947_p12 = pneg %p1251_p11 }
  0x17   : > { %p966_p2 = por %p965_p7, %p964_p5 }
  0x18   : > { %p959_p0 = pnand %p957_p13, %p947_p12 }
  0x1a   : > { %p960_p3 = pneg %p959_p0 }
  0x1c   : > { %p967_p6 = pnand %p966_p2, %p960_p3 }
  0x1e   : > { %970 = shalt.err (!%p967_p6)
}
  0x1f   : > { %s1142_s9 = smov 64   ;;  %s1143_s10 = smov 4  }
  0x20   : > { %s1496_s1 = sld [smem:[#allocation16_spill]]  ;;  %p40_p2 = scmp.ge.s32.totalorder %s38_s7, 2 }
  0x21   : > { %s47_s13 = sadd.s32 1, %s1127_s20  ;;  %p54_p6 = scmp.ne.s32.totalorder %s1127_s20, %s1123_s19 }
  0x22   : > { %p55_p9 = scmp.eq.s32.totalorder %s1139_s23, 0  ;;  %s1514_s7 = smov (%p40_p2, %s38_s7), 0 }
  0x23   : > { %1497 = sst [smem:[#allocation15_spill]] %s1514_s7  ;;  %p1499_p13 = scmp.eq.s32.totalorder %s1221_s24, 1 }
  0x24   : > { %p1269_p12 = por %p55_p9, %p54_p6  ;;  %s42_s16 = ssub.s32 %s1135_s22, %s1514_s7 }
  0x25   : > { %p1275_p0 = por %p1499_p13, %p54_p6  ;;  %p877_p3 = scmp.lt.s32.totalorder %s1139_s23, 2 }
  0x26   : > { %861 = dma.hbm_to_vmem [thread:$0]  (!%p1251_p11), %s1496_s1, 256, %s210_s30, [#allocation6], %s1142_s9, %s1142_s9, %s1143_s10  }
  0x27   : > { %p45_p11 = scmp.eq.s32.totalorder %s42_s16, 0  ;;  %s226_s17 = sand.u32 1, %s1127_s20  }
  0x28   : > { %s805_s29 = sshll.u32 %s226_s17, 3  ;;  %s806_s6 = sshll.u32 %s1135_s22, 7 }
  0x29   : > { %s1284_s30 = scalar_select %p45_p11, %s1127_s20, %s47_s13  }
  0x2a   : > { %s236_s10 = scalar_lea.hbm %s1482_s0, %s806_s6  ;;  %s230_s11 = scalar_lea.vmem [#allocation2], %s805_s29 }
  0x2b   : > { %s238_s12 = sshll.u32 %s230_s11, 4  ;;  %p1292_p5 = pnand %p877_p3, %p1269_p12  ;;  %s239_s12 = int_to_ptr.vmem [resolvable:$true] %s238_s12 }
  0x2c   : > { %s227_s1 = scalar_lea.sflag [#allocation3], %s226_s17  ;;  %s984_s16 = scalar_lea.vmem %s239_s12, 128 }
  0x2d   : > { %p973_p7 = pneg %p1292_p5  ;;  %p985_p2 = scmp.ne.s32.totalorder %s239_s12, %s984_s16 }
  0x2e   : > { %s1144_s13 = smov [#allocation2]  }
  0x2f   : > { %p987_p6 = pnand %p985_p2, %p973_p7  ;;  %s989_s7 = sshll.u32 %s1144_s13, 4  ;;  %s990_s7 = int_to_ptr.vmem [resolvable:$false] %s989_s7 }
  0x30   : > { %s991_s6 = scalar_lea.vmem %s990_s7, 256  ;;  %p992_p13 = scmp.lt.s32.totalorder %s239_s12, %s990_s7 }
  0x31   : > { %p988_p9 = pneg %p987_p6  ;;  %p993_p11 = scmp.lt.s32.totalorder %s991_s6, %s984_s16 }
  0x33   : > { %p994_p10 = por %p993_p11, %p992_p13 }
  0x35   : > { %p995_p1 = pnand %p994_p10, %p988_p9 }
  0x37   : > { %998 = shalt.err (!%p995_p1)
}
  0x38   : > { %865 = dma.hbm_to_vmem [thread:$0]  (!%p1292_p5), %s236_s10, 128, %s239_s12, %s227_s1  }
  0x39   : > { %247 = sbr.rel (%p1242_p8) target bundleno = 587 (0x24b), region = 32  ;;  %s1303_s14 = sand.u32 (!%p1242_p8), 1, %s1123_s19  }
  0x3a   : > { %s808_s17 = sshll.u32 (!%p1242_p8), %s1303_s14, 3  ;;  %s250_s29 = scalar_lea.sflag (!%p1242_p8), [#allocation3], %s1303_s14 }
  0x3b   : > { %s253_s8 = scalar_lea.vmem (!%p1242_p8), [#allocation2], %s808_s17 }
  0x3e   : > { %1102 = dma.done.wait (%p1232_p4), %s250_s29, 128  }
  0x3f   : > { %1104 = vsyncadd (%p1232_p4), %s250_s29, 4294967168  ;;  %p1502_p1 = scmp.eq.s32.totalorder %s1221_s24, 0 }
  0x41   : > { %1106 = dma.done.wait (%p1502_p1), [#allocation6], 256   ;;  %p1503_p10 = pmov %p1502_p1 }
  0x42   : > { %v1145_v0 = vmov 0.0   ;;  %vm1146_vm0 = vmmov 0   ;;  %v943_v1 = vld [vmem:[#allocation5 + $0x8] sm:$0xff]   ;;  %v944_v2 = vld [vmem:[#allocation5] sm:$0xff]   ;;  %v295_v3 = vld [vmem:[%s253_s8] sm:$0xff]  ;;  %vm320_vm1 = vcmask 261120   ;;  %v375_v14 = vlaneseq }
  0x43   : > { %1108 = vsyncadd (%p1503_p10), [#allocation6], 4294967040  ;;  %838 = vmatprep.subr.bf16.mxu0 %v1145_v0  ;;  %842 = vmatprep.mubr.msk.bf16.mxu0 %vm1146_vm0, %v1145_v0  ;;  %v296_v4 = vpack.c.bf16 %v295_v3, %v295_v3  ;;  %v813_v5 = vld [vmem:[%s1484_s2] ss:$0 sm:$0xff]  ;;  %s1147_s26 = smov 56   ;;  %s1148_s28 = smov 104  }
  0x44   : > { %839 = vmatpush3.bf16.msra.mxu0 %v943_v1  ;;  %s1149_s7 = smov 80   ;;  %v1150_v12 = vmov 1983009808   ;;  %v1151_v15 = vmov 1934713408   ;;  %v376_v18 = vshrl.u32 %v375_v14, 7 }
  0x45   : > { %840 = vmatprep.subr.bf16.mxu0 %v1145_v0  ;;  %v373_v13 = vunpack.c.l.s4 %v1150_v12  ;;  %v390_v16 = vunpack.c.l.s4 %v1151_v15  ;;  %v1152_v35 = vmov 0   ;;  %s1319_s9 = sshll.u32 %s1303_s14, 4  ;;  %vm537_vm2 = vcmask 60416   ;;  %s1153_s12 = smov 120  }
  0x46   : > { %s279_s10 = scalar_lea.vmem [#allocation7], %s1319_s9  ;;  %s1327_s16 = sshll.u32 %s1131_s21, 8 }
  0x47   : > { %v374_v17 = vunpack.c.0.s8 %v373_v13  ;;  %v391_v19 = vunpack.c.0.s8 %v390_v16  ;;  %s607_s11 = sshll.u32 %s279_s10, 4  ;;  %s1337_s17 = scalar_lea.hbm %s1485_s3, %s1327_s16  ;;  %s1329_s11 = int_to_ptr.vmem [resolvable:$true] %s607_s11 }
  0x48   : > { %841 = vmatpush3.bf16.msra.mxu0 %v944_v2  ;;  %s1154_s29 = smov 112   ;;  %s583_s21 = scalar_lea.sflag [#allocation4], %s1303_s14 }
  0x49   : > { %v377_v20 = vsub.s32 %v374_v17, %v376_v18  ;;  %v394_v24 = vsub.s32 %v391_v19, %v376_v18  ;;  %s999_s8 = scalar_lea.vmem %s1329_s11, 256  ;;  %s1155_s1 = smov [#allocation7]  }
  0x4a   : > { %p1000_p4 = scmp.ne.s32.totalorder %s1329_s11, %s999_s8  ;;  %s1003_s25 = sshll.u32 %s1155_s1, 4  ;;  %s1004_s25 = int_to_ptr.vmem [resolvable:$false] %s1003_s25 }
  0x4b   : > { %843 = vmatmul.mubr.msk.bf16.vlgmr.msra.gmra.mxu0 %vm320_vm1, %v296_v4  ;;  %p1006_p3 = scmp.lt.s32.totalorder %s1329_s11, %s1004_s25 }
  0x4c   : > { %p1001_p8 = pnand %p1000_p4, %p1275_p0 }
  0x4e   : > { %p1002_p12 = pneg %p1001_p8 }
 0x10b   : > { %v358_v6 = vpop.f32.mrf.mxu0 }
 0x10c   : > { %v359_v7 = vadd.f32 %v813_v5, %v358_v6 }
 0x10d   : > { %v844_v8 = vpop.f32.mrf.mxu0 }
 0x10e   : > { %v364_v9 = vpack.c.bf16 %v359_v7, %v359_v7 }
 0x10f   : > { %v361_v10 = vpop.f32.mrf.mxu0 }
 0x110   : > { %370 = vrot.lane.b32.xlu1 %v364_v9, %s1147_s26  ;;  %366 = vrot.lane.b32.xlu0 %v364_v9, %s1148_s28  ;;  %v378_v31 = vrot.slane %v364_v9, %v377_v20  ;;  %s1005_s26 = scalar_lea.vmem %s1004_s25, 512 }
 0x111   : > { %v845_v11 = vpop.f32.mrf.mxu0  ;;  %p1007_p5 = scmp.lt.s32.totalorder %s1005_s26, %s999_s8 }
 0x113   : > { %p1008_p7 = por %p1007_p5, %p1006_p3 }
 0x114   : > { %368 = vrot.lane.b32.xlu0 %v364_v9, %s1149_s7 }
 0x115   : > { %p1009_p2 = pnand %p1008_p7, %p1002_p12 }
 0x182   : > { %v371_v21 = vpop.permute.xlu1 %370  ;;  %v367_v22 = vpop.permute.xlu0 %366 }
 0x183   : > { %v420_v23 = vrot.slane %v371_v21, %v377_v20  ;;  %v412_v25 = vrot.slane %v367_v22, %v377_v20 }
 0x185   : > { %v421_v26 = vcombine.low %v412_v25, %v420_v23  ;;  %v422_v27 = vcombine.high %v412_v25, %v420_v23 }
 0x186   : > { %v369_v28 = vpop.permute.xlu0 %368 }
 0x187   : > { %v429_v29 = vrot.slane %v421_v26, %v394_v24  ;;  %v386_v30 = vrot.slane %v369_v28, %v377_v20  ;;  %v436_v32 = vrot.slane %v422_v27, %v394_v24 }
 0x189   : > { %v387_v33 = vcombine.low %v378_v31, %v386_v30  ;;  %v388_v34 = vcombine.high %v378_v31, %v386_v30  ;;  %v437_v36 = vcombine.high %v429_v29, %v1152_v35  ;;  %v438_v39 = vcombine.high %v436_v32, %v1152_v35 }
 0x18a   : > { %v444_v40 = vshrl.u32 %v429_v29, 16  ;;  %v460_v46 = vshrl.u32 %v436_v32, 16 }
 0x18b   : > { %v395_v37 = vrot.slane %v387_v33, %v394_v24  ;;  %v402_v38 = vrot.slane %v388_v34, %v394_v24  ;;  %v452_v45 = vshrl.u32 %v437_v36, 16  ;;  %v468_v53 = vshrl.u32 %v438_v39, 16 }
 0x18d   : > { %v403_v41 = vcombine.high %v395_v37, %v1152_v35  ;;  %v404_v42 = vcombine.high %v402_v38, %v1152_v35  ;;  %v441_v43 = vpack.i.b16 %v429_v29, %v395_v37  ;;  %v443_v44 = vshrl.u32 %v395_v37, 16 }
 0x18e   : > { %v457_v47 = vpack.i.b16 %v436_v32, %v402_v38  ;;  %v459_v48 = vshrl.u32 %v402_v38, 16 }
 0x18f   : > { %v445_v49 = vpack.i.b16 %v444_v40, %v443_v44  ;;  %v449_v50 = vpack.i.b16 %v437_v36, %v403_v41  ;;  %v451_v51 = vshrl.u32 %v403_v41, 16  ;;  %v465_v52 = vpack.i.b16 %v438_v39, %v404_v42 }
 0x190   : > { %v461_v54 = vpack.i.b16 %v460_v46, %v459_v48  ;;  %v467_v55 = vshrl.u32 %v404_v42, 16  ;;  %v471_v56 = vcombine.low %v441_v43, %v457_v47 }
 0x191   : > { %v453_v57 = vpack.i.b16 %v452_v45, %v451_v51  ;;  %v479_v58 = vcombine.low %v449_v50, %v465_v52 }
 0x192   : > { %v469_v59 = vpack.i.b16 %v468_v53, %v467_v55  ;;  %v496_v60 = vcombine.low %v445_v49, %v461_v54  ;;  %v478_v61 = vrot.slane %v471_v56, %v377_v20 }
 0x193   : > { %v486_v62 = vrot.slane %v479_v58, %v377_v20 }
 0x194   : > { %v504_v63 = vcombine.low %v453_v57, %v469_v59  ;;  %v503_v1 = vrot.slane %v496_v60, %v377_v20 }
 0x195   : > { %v487_v0 = vcombine.low %v478_v61, %v486_v62 }
 0x196   : > { %v511_v2 = vrot.slane %v504_v63, %v377_v20 }
 0x197   : > { %v494_v3 = vrot.slane %v487_v0, %v394_v24 }
 0x198   : > { %v512_v4 = vcombine.low %v503_v1, %v511_v2 }
 0x199   : > { %v495_v5 = vcombine.high %v494_v3, %v1152_v35  ;;  %v525_v8 = vshrl.u32 %v494_v3, 16 }
 0x19a   : > { %v519_v6 = vrot.slane %v512_v4, %v394_v24 }
 0x19b   : > { %v533_v11 = vshrl.u32 %v495_v5, 16 }
 0x19c   : > { %v523_v7 = vpack.i.b16 %v519_v6, %v494_v3  ;;  %v526_v9 = vshrl.u32 %v519_v6, 16  ;;  %v520_v10 = vcombine.high %v519_v6, %v1152_v35 }
 0x19e   : > { %v817_v12 = vcombine.low %v523_v7, %v523_v7  ;;  %v527_v13 = vpack.i.b16 %v526_v9, %v525_v8  ;;  %v531_v14 = vpack.i.b16 %v520_v10, %v495_v5  ;;  %v534_v15 = vshrl.u32 %v520_v10, 16  ;;  %538 = vst.msk [vmem:[%s279_s10] sm:$0xf] %vm537_vm2, %v523_v7 }
 0x1a0   : > { %550 = vrot.lane.b32.xlu1 %v817_v12, %s1153_s12  ;;  %v818_v16 = vcombine.low %v527_v13, %v527_v13  ;;  %v535_v17 = vpack.i.b16 %v534_v15, %v533_v11  ;;  %539 = vst.msk [vmem:[%s279_s10 + $0x4] sm:$0xf] %vm537_vm2, %v527_v13  ;;  %540 = vst.msk [vmem:[%s279_s10 + $0x8] sm:$0xf] %vm537_vm2, %v531_v14 }
 0x1a2   : > { %552 = vrot.lane.b32.xlu0 %v818_v16, %s1153_s12  ;;  %541 = vst.msk [vmem:[%s279_s10 + $0xc] sm:$0xf] %vm537_vm2, %v535_v17 }
 0x1a4   : > { %566 = vrot.lane.b32.xlu1 %v817_v12, %s1154_s29 }
 0x1a5   : > { %1012 = shalt.err (!%p1009_p2)
}
 0x1a6   : > { %s1013_s28 = scalar_lea.hbm %s1337_s17, 256  ;;  %s1017_s13 = scalar_lea.hbm %s1485_s3, 512 }
 0x1a7   : > { %p1014_p6 = scmp.ne.s32.totalorder %s1337_s17, %s1013_s28  ;;  %p1018_p11 = scmp.lt.s32.totalorder %s1337_s17, %s1485_s3 }
 0x1a8   : > { %p1019_p1 = scmp.lt.s32.totalorder %s1017_s13, %s1013_s28 }
 0x1a9   : > { %p1015_p9 = pnand %p1014_p6, %p1275_p0 }
 0x1aa   : > { %p1020_p10 = por %p1019_p1, %p1018_p11 }
 0x1ab   : > { %p1016_p13 = pneg %p1015_p9 }
 0x1ad   : > { %p1021_p4 = pnand %p1020_p10, %p1016_p13 }
 0x1af   : > { %1024 = shalt.err (!%p1021_p4)
}
 0x1b0   : > { %s1156_s8 = smov 64   ;;  %s1157_s25 = smov 4   ;;  %568 = vrot.lane.b32.xlu0 %v818_v16, %s1154_s29  ;;  %v819_v18 = vcombine.low %v531_v14, %v531_v14  ;;  %v820_v19 = vcombine.low %v535_v17, %v535_v17 }
 0x1b1   : > { %852 = dma.vmem_to_hbm [thread:$0]  (%p1275_p0), %s1329_s11, 256, %s1337_s17, %s583_s21, %s1156_s8, %s1156_s8, %s1157_s25  }
 0x1b2   : > { %554 = vrot.lane.b32.xlu1 %v819_v18, %s1153_s12  ;;  %s286_s26 = scalar_lea.vmem [#allocation8], %s1319_s9  ;;  %s1375_s11 = scalar_lea.vmem [#allocation10], %s1319_s9 }
 0x1b3   : > { %s624_s14 = sshll.u32 %s286_s26, 4  ;;  %s641_s21 = sshll.u32 %s1375_s11, 4  ;;  %s1382_s14 = int_to_ptr.vmem [resolvable:$true] %s624_s14  ;;  %s1421_s21 = int_to_ptr.vmem [resolvable:$true] %s641_s21 }
 0x1b4   : > { %556 = vrot.lane.b32.xlu0 %v820_v19, %s1153_s12  ;;  %s587_s12 = sand.u32 1, %s1221_s24   ;;  %s1025_s28 = scalar_lea.vmem %s1382_s14, 256 }
 0x1b5   : > { %s1393_s24 = scalar_lea.sflag [#allocation9], %s587_s12  ;;  %p1026_p8 = scmp.ne.s32.totalorder %s1382_s14, %s1025_s28 }
 0x1b6   : > { %570 = vrot.lane.b32.xlu1 %v819_v18, %s1154_s29  ;;  %s1158_s7 = smov [#allocation8]  }
 0x1b7   : > { %p1027_p12 = pnand %p1026_p8, %p1275_p0  ;;  %s1029_s10 = sshll.u32 %s1158_s7, 4  ;;  %s1030_s10 = int_to_ptr.vmem [resolvable:$false] %s1029_s10 }
 0x1b8   : > { %572 = vrot.lane.b32.xlu0 %v820_v19, %s1154_s29  ;;  %s1389_s29 = scalar_lea.hbm %s1486_s4, %s1327_s16  ;;  %s1031_s13 = scalar_lea.vmem %s1030_s10, 512 }
 0x1b9   : > { %p1028_p3 = pneg %p1027_p12  ;;  %p1032_p5 = scmp.lt.s32.totalorder %s1382_s14, %s1030_s10 }
 0x1ba   : > { %p1033_p7 = scmp.lt.s32.totalorder %s1031_s13, %s1025_s28 }
 0x1bc   : > { %p1034_p2 = por %p1033_p7, %p1032_p5 }
 0x1be   : > { %p1035_p6 = pnand %p1034_p2, %p1028_p3 }
 0x212   : > { %v551_v20 = vpop.permute.xlu1 %550 }
 0x213   : > { %562 = vst.msk [vmem:[%s286_s26] sm:$0xf] %vm537_vm2, %v551_v20 }
 0x214   : > { %v553_v21 = vpop.permute.xlu0 %552 }
 0x215   : > { %563 = vst.msk [vmem:[%s286_s26 + $0x4] sm:$0xf] %vm537_vm2, %v553_v21 }
 0x216   : > { %v567_v22 = vpop.permute.xlu1 %566 }
 0x217   : > { %578 = vst.msk [vmem:[%s1375_s11] sm:$0xf] %vm537_vm2, %v567_v22 }
 0x222   : > { %v569_v23 = vpop.permute.xlu0 %568 }
 0x223   : > { %579 = vst.msk [vmem:[%s1375_s11 + $0x4] sm:$0xf] %vm537_vm2, %v569_v23 }
 0x224   : > { %v555_v24 = vpop.permute.xlu1 %554 }
 0x225   : > { %564 = vst.msk [vmem:[%s286_s26 + $0x8] sm:$0xf] %vm537_vm2, %v555_v24 }
 0x226   : > { %v557_v25 = vpop.permute.xlu0 %556 }
 0x227   : > { %565 = vst.msk [vmem:[%s286_s26 + $0xc] sm:$0xf] %vm537_vm2, %v557_v25 }
 0x228   : > { %v571_v26 = vpop.permute.xlu1 %570 }
 0x229   : > { %1038 = shalt.err (!%p1035_p6)
}
 0x22a   : > { %s1039_s6 = scalar_lea.hbm %s1389_s29, 256  ;;  %s1043_s12 = scalar_lea.hbm %s1486_s4, 512 }
 0x22b   : > { %p1040_p9 = scmp.ne.s32.totalorder %s1389_s29, %s1039_s6  ;;  %p1044_p1 = scmp.lt.s32.totalorder %s1389_s29, %s1486_s4 }
 0x22c   : > { %p1045_p10 = scmp.lt.s32.totalorder %s1043_s12, %s1039_s6 }
 0x22d   : > { %p1041_p13 = pnand %p1040_p9, %p1275_p0 }
 0x22e   : > { %p1046_p4 = por %p1045_p10, %p1044_p1 }
 0x22f   : > { %p1042_p11 = pneg %p1041_p13 }
 0x231   : > { %p1047_p8 = pnand %p1046_p4, %p1042_p11 }
 0x233   : > { %1050 = shalt.err (!%p1047_p8)
}
 0x234   : > { %853 = dma.vmem_to_hbm [thread:$0]  (%p1275_p0), %s1382_s14, 256, %s1389_s29, %s1393_s24, %s1156_s8, %s1156_s8, %s1157_s25   ;;  %v573_v27 = vpop.permute.xlu0 %572 }
 0x235   : > { %580 = vst.msk [vmem:[%s1375_s11 + $0x8] sm:$0xf] %vm537_vm2, %v571_v26  ;;  %s1429_s10 = scalar_lea.hbm %s1487_s5, %s1327_s16  ;;  %581 = vst.msk [vmem:[%s1375_s11 + $0xc] sm:$0xf] %vm537_vm2, %v573_v27  ;;  %s1051_s13 = scalar_lea.vmem %s1421_s21, 256 }
 0x236   : > { %p1052_p12 = scmp.ne.s32.totalorder %s1421_s21, %s1051_s13  ;;  %s1159_s14 = smov [#allocation10]  }
 0x237   : > { %s1055_s29 = sshll.u32 %s1159_s14, 4  ;;  %s1056_s29 = int_to_ptr.vmem [resolvable:$false] %s1055_s29 }
 0x238   : > { %p1053_p3 = pnand %p1052_p12, %p1275_p0  ;;  %s1057_s6 = scalar_lea.vmem %s1056_s29, 512 }
 0x239   : > { %p1058_p7 = scmp.lt.s32.totalorder %s1421_s21, %s1056_s29  ;;  %p1059_p2 = scmp.lt.s32.totalorder %s1057_s6, %s1051_s13 }
 0x23a   : > { %p1054_p5 = pneg %p1053_p3 }
 0x23b   : > { %p1060_p6 = por %p1059_p2, %p1058_p7 }
 0x23d   : > { %p1061_p9 = pnand %p1060_p6, %p1054_p5 }
 0x23f   : > { %1064 = shalt.err (!%p1061_p9)
}
 0x240   : > { %s1065_s16 = scalar_lea.hbm %s1429_s10, 256  ;;  %s1069_s26 = scalar_lea.hbm %s1487_s5, 512 }
 0x241   : > { %p1066_p13 = scmp.ne.s32.totalorder %s1429_s10, %s1065_s16  ;;  %p1070_p10 = scmp.lt.s32.totalorder %s1429_s10, %s1487_s5 }
 0x242   : > { %p1071_p4 = scmp.lt.s32.totalorder %s1069_s26, %s1065_s16 }
 0x243   : > { %p1067_p11 = pnand %p1066_p13, %p1275_p0 }
 0x244   : > { %p1072_p8 = por %p1071_p4, %p1070_p10 }
 0x245   : > { %p1068_p1 = pneg %p1067_p11 }
 0x247   : > { %p1073_p12 = pnand %p1072_p8, %p1068_p1 }
 0x249   : > { %1076 = shalt.err (!%p1073_p12)
}
 0x24a   : > { %854 = dma.vmem_to_hbm [thread:$0]  (%p1275_p0), %s1421_s21, 256, %s1429_s10, %s1393_s24, %s1156_s8, %s1156_s8, %s1157_s25  }
 0x24b PF: > { %s656_s17 = sand.u32 1, %s1119_s18   ;;  %p1504_p3 = scmp.ne.s32.totalorder %s1493_s27, 0 }
 0x24c   : > { %p1505_p5 = scmp.ge.s32.totalorder %s1139_s23, 2  ;;  %s657_s28 = scalar_lea.sflag [#allocation4], %s656_s17 }
 0x24e   : > { %p867_p7 = pnand %p1505_p5, %p1504_p3 }
 0x250   : > { %p868_p2 = pneg %p867_p7 }
 0x252   : > { %1110 = dma.done.wait (%p868_p2), %s657_s28, 256  }
 0x253   : > { %1112 = vsyncadd (%p868_p2), %s657_s28, 4294967040  ;;  %s1506_s15 = sadd.s32 4294967294, %s1139_s23  }
 0x254   : > { %s665_s7 = sand.u32 1, %s1506_s15  }
 0x255   : > { %s666_s13 = scalar_lea.sflag [#allocation9], %s665_s7 }
 0x256   : > { %1114 = dma.done.wait (%p868_p2), %s666_s13, 512  }
 0x257   : > { %1116 = vsyncadd (%p868_p2), %s666_s13, 4294966784  ;;  %s26_s23 = sadd.s32 1, %s1139_s23   ;;  %s1507_s27 = sld [smem:[#allocation15_spill]] }
 0x258   : > { %p23_p0 = scmp.ge.s32.totalorder %s26_s23, 4   ;;  %s1508_s18 = smov %s1123_s19 }
 0x259   : > { %s1509_s19 = smov %s1127_s20  ;;  %s1510_s20 = smov %s1284_s30 }
 0x25a   : > { %s1511_s21 = smov %s1135_s22  ;;  %25 = sbr.rel (!%p23_p0) target bundleno = 11 (0xb), region = 113 }
 0x25d   : > { %s1512_s22 = smov %s1507_s27 }
 0x25f   :  { %680 = vsyncpa [#allocation3], 1 }
 0x260   :  { %682 = vsyncpa [#allocation3 + $0x1], 1 }
 0x261   :  { %683 = vsyncpa [#allocation6], 1 }
 0x262   :  { %684 = vsyncpa [#allocation4], 1 }
 0x263   :  { %686 = vsyncpa [#allocation4 + $0x1], 1 }
 0x264   :  { %687 = vsyncpa [#allocation9], 1 }
 0x265   :  { %689 = vsyncpa [#allocation9 + $0x1], 1 }

</bundles_post_ra>
